<compile_context>
chip_gen: v7x
topology: tpu7x:2x2x1
jax: 0.10.0
libtpu: 0.0.40
codegen_flags: <defaults>
</compile_context>

<pallas_src>
import jax
import jax.numpy as jnp
from jax.experimental import pallas as pl
from jax.experimental.pallas import tpu as pltpu


_VMEM_CAP = 48 * 1024 * 1024     # leave headroom under v7x's 64 MiB physical VMEM
_VMEM_FLOOR = 32 * 1024 * 1024   # v5e scoped default (16 MiB) is too small for 2x buffering


def _vmem_limit(needed_bytes):
    return int(min(_VMEM_CAP, max(_VMEM_FLOOR, needed_bytes + (8 << 20))))


def _upconv_fused_kernel(x_ref, w_ref, b_ref, o_ref):
    # x_ref: (bg*W, Cin) bf16          w_ref: (KH, Cin, KW*Cout) bf16 (whole, VMEM resident)
    # b_ref: (1, KW*Cout) f32          o_ref: (bg, W, KW*Cout) out dtype
    kh = pl.program_id(1)
    acc = jnp.dot(x_ref[...], w_ref[kh], preferred_element_type=jnp.float32)
    acc = acc + b_ref[...]
    bg, wd, cc = o_ref.shape
    # tm == bg*W with W % 8 == 0 -> this reshape is a pure retiling (no data movement)
    o_ref[...] = acc.reshape(bg, wd, cc).astype(o_ref.dtype)


def _upconv_rows_kernel(x_ref, w_ref, b_ref, o_ref):
    # Fallback kernel (no fused shuffle): (tm, Cin) @ (Cin, 4*Cout) + bias
    acc = jnp.dot(x_ref[...], w_ref[...], preferred_element_type=jnp.float32)
    o_ref[...] = (acc + b_ref[...]).astype(o_ref.dtype)


def up_conv_forward_nhwc(x_nhwc, weight, bias, *, tm=1024, out_dtype=None):
    """ConvTranspose2d(kernel_size=2, stride=2) on NHWC input.

    x_nhwc : (N, H, W, Cin)
    weight : (Cin, Cout, 2, 2)   (PyTorch ConvTranspose2d layout)
    bias   : (Cout,)
    returns: (N, 2H, 2W, Cout) in out_dtype (default: x dtype)
    """
    N, H, W, Cin = x_nhwc.shape
    Cin_w, Cout, KH, KW = weight.shape
    assert Cin == Cin_w and KH == 2 and KW == 2
    if out_dtype is None:
        out_dtype = x_nhwc.dtype
    out_bytes = jnp.dtype(out_dtype).itemsize

    M = N * H * W
    x_flat = x_nhwc.reshape(M, Cin).astype(jnp.bfloat16)

    if W % 8 == 0:
        # ---------- fused pixel-shuffle path ----------
        # columns ordered (kw, co); grid axis 1 picks kh -> output slab
        # (N*H, KH, W, KW*Cout) reshapes for free to NHWC (N, 2H, 2W, Cout).
        ccols = KW * Cout
        w_k = jnp.transpose(weight, (2, 0, 3, 1)).reshape(KH, Cin, ccols)
        w_k = w_k.astype(jnp.bfloat16)
        b_k = jnp.tile(bias, KW).reshape(1, ccols).astype(jnp.float32)

        G = N * H                              # input spatial rows
        bg = max(1, min(G, tm // W))           # h-rows per tile
        min_blocks = 4                         # >=2 blocks per TC (v7x) / pipeline overlap
        if G >= min_blocks:
            bg = min(bg, max(1, G // min_blocks))
        if ((bg * W) % 16) and bg > 1:         # bf16 packs 16 rows per sublane pair
            bg -= bg % 2
        tile_rows = bg * W                     # multiple of 8 (W % 8 == 0)
        grid_g = pl.cdiv(G, bg)

        vmem_needed = (2 * tile_rows * Cin * 2              # double-buffered x stream (bf16)
                       + 2 * tile_rows * ccols * out_bytes  # double-buffered out stream
                       + KH * Cin * ccols * 2               # whole weight, single buffer
                       + ccols * 4)                         # bias
        cost = pl.CostEstimate(
            flops=2 * M * Cin * KH * ccols,
            transcendentals=0,
            bytes_accessed=(M * Cin * 2 + KH * Cin * ccols * 2 + ccols * 4
                            + M * KH * ccols * out_bytes))

        out = pl.pallas_call(
            _upconv_fused_kernel,
            out_shape=jax.ShapeDtypeStruct((G, KH, W, ccols), out_dtype),
            grid=(grid_g, KH),
            in_specs=[
                # x block depends only on i -> fetched once, reused for both kh steps
                pl.BlockSpec((tile_rows, Cin), lambda i, kh: (i, 0)),
                pl.BlockSpec(memory_space=pltpu.MemorySpace.VMEM),   # whole weight
                pl.BlockSpec(memory_space=pltpu.MemorySpace.VMEM),   # bias
            ],
            out_specs=pl.BlockSpec((bg, None, W, ccols), lambda i, kh: (i, kh, 0, 0)),
            compiler_params=pltpu.CompilerParams(
                dimension_semantics=("parallel", "arbitrary"),
                vmem_limit_bytes=_vmem_limit(vmem_needed)),
            cost_estimate=cost,
        )(x_flat, w_k, b_k)

        # pure metadata reshape -> NHWC
        return out.reshape(N, H * KH, W * KW, Cout)

    # ---------- fallback (W not a multiple of 8): matmul kernel + XLA pixel shuffle ----------
    # TODO(synk): fusing the shuffle for odd widths would need an in-kernel sublane relayout.
    ccols = KH * KW * Cout
    w_mat = jnp.transpose(weight, (0, 2, 3, 1)).reshape(Cin, ccols).astype(jnp.bfloat16)
    b_mat = jnp.tile(bias, KH * KW).reshape(1, ccols).astype(jnp.float32)

    tile_rows = M if M <= tm else tm           # tm (1024) is a multiple of 16
    grid_m = pl.cdiv(M, tile_rows)
    vmem_needed = (2 * tile_rows * Cin * 2 + 2 * tile_rows * ccols * out_bytes
                   + Cin * ccols * 2 + ccols * 4)
    cost = pl.CostEstimate(
        flops=2 * M * Cin * ccols, transcendentals=0,
        bytes_accessed=(M * Cin * 2 + Cin * ccols * 2 + ccols * 4
                        + M * ccols * out_bytes))

    out = pl.pallas_call(
        _upconv_rows_kernel,
        out_shape=jax.ShapeDtypeStruct((M, ccols), out_dtype),
        grid=(grid_m,),
        in_specs=[
            pl.BlockSpec((tile_rows, Cin), lambda i: (i, 0)),
            pl.BlockSpec(memory_space=pltpu.MemorySpace.VMEM),
            pl.BlockSpec(memory_space=pltpu.MemorySpace.VMEM),
        ],
        out_specs=pl.BlockSpec((tile_rows, ccols), lambda i: (i, 0)),
        compiler_params=pltpu.CompilerParams(
            dimension_semantics=("parallel",),
            vmem_limit_bytes=_vmem_limit(vmem_needed)),
        cost_estimate=cost,
    )(x_flat, w_mat, b_mat)

    out = out.reshape(N, H, W, KH, KW, Cout)
    out = jnp.transpose(out, (0, 1, 3, 2, 4, 5))
    return out.reshape(N, H * KH, W * KW, Cout)


def up_conv_forward(x_nchw, weight, bias, *, tm=1024):
    """Matches nn.ConvTranspose2d(ch_in, ch_out, 2, stride=2): NCHW in -> NCHW out."""
    # Input transpose fuses with the bf16 cast inside; output transpose fuses with the
    # cast back to the module dtype. Kernel output stream itself is bf16 (half bytes).
    x_nhwc = jnp.transpose(x_nchw, (0, 2, 3, 1))
    out_nhwc = up_conv_forward_nhwc(x_nhwc, weight, bias, tm=tm, out_dtype=jnp.bfloat16)
    return jnp.transpose(out_nhwc, (0, 3, 1, 2)).astype(x_nchw.dtype)


def _reference(x_nchw, weight, bias):
    # out[n, co, 2h+kh, 2w+kw] = sum_ci x[n,ci,h,w] * W[ci,co,kh,kw] + b[co]
    N, Cin, H, W = x_nchw.shape
    _, Cout, KH, KW = weight.shape
    o = jnp.einsum('nchw,cokl->nohkwl', x_nchw, weight)
    o = o.reshape(N, Cout, H * KH, W * KW)
    return o + bias[None, :, None, None]


if __name__ == "__main__":
    key = jax.random.PRNGKey(0)
    k_x, k_w, k_b = jax.random.split(key, 3)

    fwd = jax.jit(up_conv_forward)

    # --- main check (module-sized small shapes) ---
    N, ch_in, ch_out, H, W = 2, 4, 8, 16, 16
    x = jax.random.normal(k_x, (N, ch_in, H, W), dtype=jnp.float32)
    weight = jax.random.normal(k_w, (ch_in, ch_out, 2, 2), dtype=jnp.float32) * 0.1
    bias = jax.random.normal(k_b, (ch_out,), dtype=jnp.float32) * 0.1

    out = jax.block_until_ready(fwd(x, weight, bias))
    ref = _reference(x, weight, bias)
    assert out.shape == (N, ch_out, 2 * H, 2 * W), out.shape
    # bf16 inputs / bf16 output stream with f32 MXU accumulation -> bf16 tolerance
    assert jnp.allclose(out, ref, atol=2e-2, rtol=2e-2), "mismatch vs reference"

    # --- ragged-tile check (row count not a multiple of the tile) ---
    N2, H2, W2 = 1, 11, 16
    x2 = jax.random.normal(k_x, (N2, ch_in, H2, W2), dtype=jnp.float32)
    out2 = jax.block_until_ready(fwd(x2, weight, bias))
    ref2 = _reference(x2, weight, bias)
    assert out2.shape == (N2, ch_out, 2 * H2, 2 * W2), out2.shape
    assert jnp.allclose(out2, ref2, atol=2e-2, rtol=2e-2), "mismatch vs reference (ragged)"

    print("KERNEL_OK")
</pallas_src>

<mosaic_0001>
module attributes {stable_mosaic.version = 11 : i64} {
  func.func @_upconv_fused_kernel(%arg0: i32, %arg1: i32, %arg2: memref<128x4xbf16, #tpu.memory_space<vmem>>, %arg3: memref<2x4x16xbf16, #tpu.memory_space<vmem>>, %arg4: memref<1x16xf32, #tpu.memory_space<vmem>>, %arg5: memref<8x1x16x16xbf16, #tpu.memory_space<vmem>>) attributes {dimension_semantics = [#tpu.dimension_semantics<parallel>, #tpu.dimension_semantics<arbitrary>], iteration_bounds = array<i64: 4, 2>, scalar_prefetch = 0 : i64, scratch_operands = 0 : i64, tpu.core_type = #tpu.core_type<tc>, window_params = [{transform_indices = @transform_0, window_bounds = array<i64: 128, 4>}, {pipeline_mode = #tpu.pipeline_mode<synchronous>, transform_indices = @transform_1, window_bounds = array<i64: 2, 4, 16>}, {pipeline_mode = #tpu.pipeline_mode<synchronous>, transform_indices = @transform_2, window_bounds = array<i64: 1, 16>}, {transform_indices = @transform_3, window_bounds = array<i64: 8, 1, 16, 16>}]} {
    %c0 = arith.constant 0 : index
    %c0_0 = arith.constant 0 : index
    %0 = vector.load %arg2[%c0, %c0_0] : memref<128x4xbf16, #tpu.memory_space<vmem>>, vector<128x4xbf16>
    %1 = arith.index_cast %arg1 : i32 to index
    %c0_1 = arith.constant 0 : index
    %c0_2 = arith.constant 0 : index
    %2 = vector.load %arg3[%1, %c0_1, %c0_2] : memref<2x4x16xbf16, #tpu.memory_space<vmem>>, vector<1x4x16xbf16>
    %3 = vector.shape_cast %2 : vector<1x4x16xbf16> to vector<4x16xbf16>
    %cst = arith.constant dense<0.000000e+00> : vector<128x16xf32>
    %4 = tpu.matmul %0, %3, %cst {dimension_numbers = #tpu.dot_dimension_numbers<[1], [0], [0], [1], [0, 0, 1, 1], [], []>} : vector<128x4xbf16>, vector<4x16xbf16>, vector<128x16xf32> -> vector<128x16xf32>
    %c0_3 = arith.constant 0 : index
    %c0_4 = arith.constant 0 : index
    %5 = vector.load %arg4[%c0_3, %c0_4] : memref<1x16xf32, #tpu.memory_space<vmem>>, vector<1x16xf32>
    %6 = vector.broadcast %5 : vector<1x16xf32> to vector<128x16xf32>
    %7 = arith.addf %4, %6 : vector<128x16xf32>
    %8 = vector.shape_cast %7 : vector<128x16xf32> to vector<8x16x16xf32>
    %9 = arith.truncf %8 : vector<8x16x16xf32> to vector<8x16x16xbf16>
    %c0_5 = arith.constant 0 : index
    %c0_6 = arith.constant 0 : index
    %c0_7 = arith.constant 0 : index
    %c0_8 = arith.constant 0 : index
    %10 = vector.load %arg5[%c0_5, %c0_6, %c0_7, %c0_8] : memref<8x1x16x16xbf16, #tpu.memory_space<vmem>>, vector<8x1x16x16xbf16>
    %11 = vector.shape_cast %10 : vector<8x1x16x16xbf16> to vector<8x16x16xbf16>
    %12 = vector.shape_cast %9 : vector<8x16x16xbf16> to vector<8x1x16x16xbf16>
    tpu.vector_store %arg5[%c0_5, %c0_6, %c0_7, %c0_8], %12 {strides = array<i32>} : memref<8x1x16x16xbf16, #tpu.memory_space<vmem>>, vector<8x1x16x16xbf16>,
    return
  }
  func.func @transform_0(%arg0: i32, %arg1: i32) -> (i32, i32) {
    %c0_i32 = arith.constant 0 : i32
    %c0_i32_0 = arith.constant 0 : i32
    return %arg0, %c0_i32 : i32, i32
  }
  func.func @transform_1(%arg0: i32, %arg1: i32) -> (i32, i32, i32) {
    %c0_i32 = arith.constant 0 : i32
    %c0_i32_0 = arith.constant 0 : i32
    %c0_i32_1 = arith.constant 0 : i32
    %c0_i32_2 = arith.constant 0 : i32
    return %c0_i32, %c0_i32_0, %c0_i32_1 : i32, i32, i32
  }
  func.func @transform_2(%arg0: i32, %arg1: i32) -> (i32, i32) {
    %c0_i32 = arith.constant 0 : i32
    %c0_i32_0 = arith.constant 0 : i32
    %c0_i32_1 = arith.constant 0 : i32
    return %c0_i32, %c0_i32_0 : i32, i32
  }
  func.func @transform_3(%arg0: i32, %arg1: i32) -> (i32, i32, i32, i32) {
    %c0_i32 = arith.constant 0 : i32
    %c0_i32_0 = arith.constant 0 : i32
    %c0_i32_1 = arith.constant 0 : i32
    return %arg0, %arg1, %c0_i32, %c0_i32_0 : i32, i32, i32, i32
  }
}

</mosaic_0001>

<bundles_post_ra>
// kernel: tile.9
= control target key start
LH: loop header
LB: loop body
LE: loop exit
PB: predicated region body
PF: predicated region fallthrough
CT: control target
= control target key end

     0   :  { %vm7_vm0 = vcmask 64512   ;;  %vm13_vm1 = vcmask 130112   ;;  %s39_s0 = inlined_call_operand.vmem [shape: f32[2,8], index: 0, kind: input, shape index: {}]   ;;  %s40_s1 = inlined_call_operand.vmem [shape: f32[1,16], index: 1, kind: output, shape index: {}]  }
   0x1   :  { %v4_v0 = vld [vmem:[%s39_s0] sm:$0x3]  ;;  %s22_s0 = smov 8  }
   0x2   :  { %5 = vst [vmem:[#allocation1] sm:$0x3] %v4_v0 }
   0x9   :  { %v10_v1 = vld [vmem:[#allocation1 + $0x1] sm:$0x1]   ;;  %v6_v2 = vld [vmem:[#allocation1] sm:$0x1]  }
   0xa   :  { %11 = vrot.lane.b32.xlu0 %v10_v1, %s22_s0  ;;  %8 = vst.msk [vmem:[#allocation0] sm:$0x1] %vm7_vm0, %v6_v2  }
  0x7c   :  { %v12_v3 = vpop.permute.xlu0 %11  }
  0x7d   :  { %14 = vst.msk [vmem:[#allocation0] sm:$0x1] %vm13_vm1, %v12_v3  }
  0x84   :  { %v18_v4 = vld [vmem:[#allocation0] sm:$0x1] }
  0x85   :  { %20 = vst [vmem:[%s40_s1] sm:$0x1] %v18_v4 }

// kernel: tile.8
= control target key start
LH: loop header
LB: loop body
LE: loop exit
PB: predicated region body
PF: predicated region fallthrough
CT: control target
= control target key end

     0   :  { %s22_s0 = inlined_call_operand.vmem [shape: f32[8], index: 0, kind: input, shape index: {}]   ;;  %s23_s1 = inlined_call_operand.vmem [shape: f32[2,8], index: 1, kind: output, shape index: {}]  }
   0x1   :  { %v4_v0 = vld [vmem:[%s22_s0] ss:$0 sm:$0xff] }
   0x2   :  { %5 = vst [vmem:[%s23_s1] sm:$0x3] %v4_v0 }

// kernel: up_conv_forward.1
= control target key start
LH: loop header
LB: loop body
LE: loop exit
PB: predicated region body
PF: predicated region fallthrough
CT: control target
= control target key end

     0   :  { %s872_s12 = smov 0   ;;  %s874_s13 = smov 0   ;;  %s1024_s0 = inlined_call_operand.vmem [shape: bf16[512,4], index: 0, kind: input, shape index: {}]   ;;  %s1025_s1 = inlined_call_operand.vmem [shape: bf16[2,4,16], index: 1, kind: input, shape index: {}]   ;;  %s1026_s2 = inlined_call_operand.vmem [shape: f32[1,16], index: 2, kind: input, shape index: {}]   ;;  %s1027_s3 = inlined_call_operand.vmem [shape: bf16[32,2,16,16], index: 3, kind: output, shape index: {}]  }
   0x1   :  { %s876_s14 = smov 0   ;;  %s878_s15 = smov 0  }
   0x2   :  { %s880_s16 = smov 0   ;;  %s882_s17 = smov 0  }
   0x3   :  { %s884_s18 = smov 0  }
   0x4 LB: > { %s22_s19 = sadd.s32 1, %s842_s16  ;;  %s25_s20 = sadd.s32 1, %s846_s17  ;;  %s850_s18 = sphi %s884_s18, %s13_s18   ;;  %s846_s17 = sphi %s882_s17, %s1034_s17   ;;  %s842_s16 = sphi %s880_s16, %s1033_s16   ;;  %s838_s15 = sphi %s878_s15, %s1032_s15   ;;  %s834_s14 = sphi %s876_s14, %s1031_s14   ;;  %s830_s13 = sphi %s874_s13, %s1030_s13   ;;  %s826_s12 = sphi %s872_s12, %s1029_s12  }
   0x5   : > { %p23_p0 = scmp.ge.s32.totalorder %s22_s19, 2  ;;  %s635_s21 = sadd.s32 4294967295, %s850_s18  }
   0x6   : > { %p112_p1 = scmp.ne.s32.totalorder %s830_s13, %s826_s12  ;;  %p113_p2 = scmp.eq.s32.totalorder %s635_s21, 7 }
   0x7   : > { %s1036_s19 = smov (%p23_p0, %s22_s19), 0  ;;  %s1038_s20 = smov (!%p23_p0, %s25_s20), %s846_s17 }
   0x8   : > { %s98_s22 = ssub.s32 %s842_s16, %s1036_s19  ;;  %p27_p3 = scmp.ge.s32.totalorder %s1038_s20, 4 }
   0x9   : > { %p639_p4 = scmp.ge.s32.totalorder %s850_s18, 1  ;;  %p918_p5 = por %p113_p2, %p112_p1 }
   0xa   : > { %p152_p6 = scmp.lt.s32.totalorder %s850_s18, 9  ;;  %s1040_s20 = smov (%p27_p3, %s1038_s20), 0 }
   0xb   : > { %s97_s24 = ssub.s32 %s846_s17, %s1040_s20  ;;  %s102_s26 = sadd.s32 1, %s830_s13 }
   0xc   : > { %p153_p7 = pnand %p639_p4, %p152_p6  ;;  %s99_s25 = sor.u32 %s98_s22, %s97_s24 }
   0xd   : > { %p100_p8 = scmp.eq.s32.totalorder %s99_s25, 0  ;;  %s643_s28 = sshll.u32 (!%p153_p7), %s834_s14, 1  ;;  %vm274_vm0 = vcmask (!%p153_p7), 1041408   ;;  %vm249_vm1 = vcmask (!%p153_p7), 31744   ;;  %v644_v10 = vld [vmem:[%s1026_s2] ss:$0 sm:$0xff] (!%p153_p7) }
   0xe   : > { %156 = sbr.rel (%p153_p7) target bundleno = 263 (0x107), region = 32  ;;  %s641_s29 = sshll.u32 (!%p153_p7), %s838_s15, 4  ;;  %vm439_vm2 = vcmask (!%p153_p7), 125952  }
   0xf   : > { %s929_s27 = scalar_select %p100_p8, %s830_s13, %s102_s26  }
  0x10   : > { %s200_s5 = scalar_lea.vmem (!%p153_p7), %s1025_s1, %s643_s28  ;;  %p176_p9 = scmp.lt.s32.totalorder (!%p153_p7), %s641_s29, 63 }
  0x11   : > { %v201_v0 = vld [vmem:[%s200_s5] sm:$0x3] (!%p153_p7)  ;;  %s172_s10 = sand.u32 (!%p153_p7), 1, %s826_s12  }
  0x12   : > { %730 = vmatprep.subr.msk.bf16.mxu0 (!%p153_p7), %vm274_vm0, %v201_v0  ;;  %731 = vmatprep.subr.msk.bf16.mxu1 (!%p153_p7), %vm274_vm0, %v201_v0  ;;  %v276_v1 = vsel (!%p153_p7), %vm274_vm0, %v201_v0, 0  ;;  %s640_s22 = sshll.u32 (!%p153_p7), %s172_s10, 6 }
  0x13   : > { %711 = vmatpush3.bf16.msra.mxu0 (!%p153_p7), %v276_v1  ;;  %729 = vmatpush3.bf16.msra.mxu1 (!%p153_p7), %v276_v1  ;;  %s953_s12 = scalar_lea.vmem (!%p153_p7), [#allocation2], %s640_s22 }
  0x15   : > { %s1042_s29 = smov (!%p176_p9, %s641_s29), 63  ;;  %s700_s24 = sshll.u32 (%p918_p5), %s838_s15, 5 }
  0x16   : > { %s642_s6 = sshll.u32 %s1042_s29, 2  ;;  %s466_s25 = sadd.s32 (%p918_p5), %s700_s24, %s643_s28 }
  0x17   : > { %s179_s9 = scalar_lea.vmem %s1024_s0, %s642_s6  ;;  %s681_s23 = sshll.u32 (%p918_p5), %s466_s25, 2 }
  0x18   : > { %v788_v2 = vld [vmem:[%s179_s9] sm:$0xff]   ;;  %v790_v4 = vld [vmem:[%s179_s9 + $0x8] sm:$0xff]   ;;  %v792_v6 = vld [vmem:[%s179_s9 + $0x10] sm:$0xff]   ;;  %s468_s30 = scalar_lea.vmem (%p918_p5), %s1027_s3, %s681_s23 }
  0x19   : > { %v789_v3 = vld [vmem:[%s179_s9 + $0x20] sm:$0xff]   ;;  %712 = vmatprep.mubr.msk.bf16.mxu0 %vm249_vm1, %v788_v2  ;;  %v791_v5 = vld [vmem:[%s179_s9 + $0x28] sm:$0xff]   ;;  %v793_v7 = vld [vmem:[%s179_s9 + $0x30] sm:$0xff]  }
  0x1a   : > { %720 = vmatprep.mubr.msk.bf16.mxu1 %vm249_vm1, %v789_v3  ;;  %713 = vmatmul.mubr.msk.bf16.vlgmr.msra.gmra.mrb[0].mxu0 %vm249_vm1, %v790_v4  ;;  %v794_v8 = vld [vmem:[%s179_s9 + $0x18] sm:$0xff]  }
  0x1b   : > { %721 = vmatmul.mubr.msk.bf16.vlgmr.msra.gmra.mrb[0].mxu1 %vm249_vm1, %v791_v5  ;;  %716 = vmatprep.mubr.msk.bf16.mxu0 %vm249_vm1, %v792_v6  ;;  %v795_v9 = vld [vmem:[%s179_s9 + $0x38] sm:$0xff]  }
  0x1c   : > { %724 = vmatprep.mubr.msk.bf16.mxu1 %vm249_vm1, %v793_v7 }
  0x22   : > { %717 = vmatmul.mubr.msk.bf16.gmra.mrb[4].mxu0 %vm249_vm1, %v794_v8 }
  0x23   : > { %725 = vmatmul.mubr.msk.bf16.gmra.mrb[4].mxu1 %vm249_vm1, %v795_v9 }
  0xed   : > { %v714_v11 = vpop.f32.mrb[0].mxu0 }
  0xee   : > { %v321_v12 = vadd.f32 %v714_v11, %v644_v10  ;;  %v722_v13 = vpop.f32.mrb[0].mxu1  ;;  %v312_v14 = vpop.f32.mrb[1].mxu0 }
  0xef   : > { %v353_v15 = vadd.f32 %v722_v13, %v644_v10  ;;  %v313_v16 = vadd.f32 %v644_v10, %v312_v14  ;;  %v344_v17 = vpop.f32.mrb[1].mxu1  ;;  %v715_v18 = vpop.f32.mrb[2].mxu0 }
  0xf0   : > { %v686_v19 = vpack.c.bf16 %v321_v12, %v321_v12  ;;  %v345_v20 = vadd.f32 %v644_v10, %v344_v17  ;;  %v324_v21 = vadd.f32 %v715_v18, %v644_v10  ;;  %v723_v22 = vpop.f32.mrb[2].mxu1  ;;  %v315_v23 = vpop.f32.mrb[3].mxu0 }
  0xf1   : > { %v694_v24 = vpack.c.bf16 %v353_v15, %v353_v15  ;;  %v684_v25 = vpack.c.bf16 %v313_v16, %v313_v16  ;;  %v356_v26 = vadd.f32 %v723_v22, %v644_v10  ;;  %v316_v27 = vadd.f32 %v644_v10, %v315_v23  ;;  %v347_v28 = vpop.f32.mrb[3].mxu1 }
  0xf2   : > { %442 = vst.msk [vmem:[%s953_s12 + $0x8] sm:$0xf] %vm439_vm2, %v686_v19  ;;  %v692_v29 = vpack.c.bf16 %v345_v20, %v345_v20  ;;  %v687_v30 = vpack.c.bf16 %v324_v21, %v324_v21  ;;  %v348_v31 = vadd.f32 %v644_v10, %v347_v28 }
  0xf3   : > { %450 = vst.msk [vmem:[%s953_s12 + $0x28] sm:$0xf] %vm439_vm2, %v694_v24  ;;  %440 = vst.msk [vmem:[%s953_s12] sm:$0xf] %vm439_vm2, %v684_v25  ;;  %v695_v32 = vpack.c.bf16 %v356_v26, %v356_v26  ;;  %v685_v33 = vpack.c.bf16 %v316_v27, %v316_v27 }
  0xf4   : > { %448 = vst.msk [vmem:[%s953_s12 + $0x20] sm:$0xf] %vm439_vm2, %v692_v29  ;;  %443 = vst.msk [vmem:[%s953_s12 + $0xc] sm:$0xf] %vm439_vm2, %v687_v30  ;;  %v693_v34 = vpack.c.bf16 %v348_v31, %v348_v31 }
  0xf5   : > { %451 = vst.msk [vmem:[%s953_s12 + $0x2c] sm:$0xf] %vm439_vm2, %v695_v32  ;;  %441 = vst.msk [vmem:[%s953_s12 + $0x4] sm:$0xf] %vm439_vm2, %v685_v33  ;;  %v718_v35 = vpop.f32.mrb[4].mxu0 }
  0xf6   : > { %449 = vst.msk [vmem:[%s953_s12 + $0x24] sm:$0xf] %vm439_vm2, %v693_v34  ;;  %v337_v36 = vadd.f32 %v718_v35, %v644_v10  ;;  %v726_v37 = vpop.f32.mrb[4].mxu1  ;;  %v328_v38 = vpop.f32.mrb[5].mxu0 }
  0xf7   : > { %v369_v39 = vadd.f32 %v726_v37, %v644_v10  ;;  %v329_v40 = vadd.f32 %v644_v10, %v328_v38  ;;  %v360_v41 = vpop.f32.mrb[5].mxu1  ;;  %v719_v42 = vpop.f32.mrb[6].mxu0 }
  0xf8   : > { %v690_v43 = vpack.c.bf16 %v337_v36, %v337_v36  ;;  %v361_v44 = vadd.f32 %v644_v10, %v360_v41  ;;  %v340_v45 = vadd.f32 %v719_v42, %v644_v10  ;;  %v727_v46 = vpop.f32.mrb[6].mxu1  ;;  %v331_v47 = vpop.f32.mrb[7].mxu0  ;;  %462 = sbr.rel (!%p918_p5) target bundleno = 263 (0x107), region = 36 }
  0xf9   : > { %v698_v48 = vpack.c.bf16 %v369_v39, %v369_v39  ;;  %v688_v49 = vpack.c.bf16 %v329_v40, %v329_v40  ;;  %v372_v50 = vadd.f32 %v727_v46, %v644_v10  ;;  %v332_v51 = vadd.f32 %v644_v10, %v331_v47  ;;  %v363_v52 = vpop.f32.mrb[7].mxu1 }
  0xfa   : > { %446 = vst.msk [vmem:[%s953_s12 + $0x18] sm:$0xf] %vm439_vm2, %v690_v43  ;;  %v696_v53 = vpack.c.bf16 %v361_v44, %v361_v44  ;;  %v691_v54 = vpack.c.bf16 %v340_v45, %v340_v45  ;;  %v364_v55 = vadd.f32 %v644_v10, %v363_v52 }
  0xfb   : > { %454 = vst.msk [vmem:[%s953_s12 + $0x38] sm:$0xf] %vm439_vm2, %v698_v48  ;;  %444 = vst.msk [vmem:[%s953_s12 + $0x10] sm:$0xf] %vm439_vm2, %v688_v49  ;;  %v699_v56 = vpack.c.bf16 %v372_v50, %v372_v50  ;;  %v689_v57 = vpack.c.bf16 %v332_v51, %v332_v51  ;;  %v488_v60 = vld [vmem:[%s953_s12 + $0x8] sm:$0xff] (%p918_p5)  }
  0xfc   : > { %452 = vst.msk [vmem:[%s953_s12 + $0x30] sm:$0xf] %vm439_vm2, %v696_v53  ;;  %447 = vst.msk [vmem:[%s953_s12 + $0x1c] sm:$0xf] %vm439_vm2, %v691_v54  ;;  %v697_v58 = vpack.c.bf16 %v364_v55, %v364_v55  ;;  %v484_v59 = vld [vmem:[%s953_s12] sm:$0xff] (%p918_p5)   ;;  %v504_v0 = vld [vmem:[%s953_s12 + $0x28] sm:$0xff] (%p918_p5)  }
  0xfd   : > { %455 = vst.msk [vmem:[%s953_s12 + $0x3c] sm:$0xf] %vm439_vm2, %v699_v56  ;;  %445 = vst.msk [vmem:[%s953_s12 + $0x14] sm:$0xf] %vm439_vm2, %v689_v57  ;;  %v500_v63 = vld [vmem:[%s953_s12 + $0x20] sm:$0xff] (%p918_p5)  }
  0xfe   : > { %453 = vst.msk [vmem:[%s953_s12 + $0x34] sm:$0xf] %vm439_vm2, %v697_v58  ;;  %485 = vst [vmem:[%s468_s30] sm:$0xff] (%p918_p5), %v484_v59  }
  0xff   : > { %489 = vst [vmem:[%s468_s30 + $0x10] sm:$0xff] %v488_v60   ;;  %501 = vst [vmem:[%s468_s30 + $0x40] sm:$0xff] %v500_v63  }
 0x100   : > { %505 = vst [vmem:[%s468_s30 + $0x50] sm:$0xff] %v504_v0  }
 0x103   : > { %v496_v62 = vld [vmem:[%s953_s12 + $0x18] sm:$0xff]  }
 0x104   : > { %v492_v61 = vld [vmem:[%s953_s12 + $0x10] sm:$0xff]   ;;  %v512_v2 = vld [vmem:[%s953_s12 + $0x38] sm:$0xff]   ;;  %497 = vst [vmem:[%s468_s30 + $0x30] sm:$0xff] %v496_v62  }
 0x105   : > { %v508_v1 = vld [vmem:[%s953_s12 + $0x30] sm:$0xff]   ;;  %493 = vst [vmem:[%s468_s30 + $0x20] sm:$0xff] %v492_v61   ;;  %513 = vst [vmem:[%s468_s30 + $0x70] sm:$0xff] %v512_v2  }
 0x106   : > { %509 = vst [vmem:[%s468_s30 + $0x60] sm:$0xff] %v508_v1  }
 0x107 PF: > { %s13_s18 = sadd.s32 1, %s850_s18   ;;  %s1029_s12 = smov %s830_s13 }
 0x108   : > { %p10_p10 = scmp.ge.s32.totalorder %s13_s18, 10   ;;  %s1030_s13 = smov %s929_s27 }
 0x109   : > { %s1031_s14 = smov %s842_s16  ;;  %s1032_s15 = smov %s846_s17 }
 0x10a   : > { %s1033_s16 = smov %s1036_s19  ;;  %s1034_s17 = smov %s1040_s20 }
 0x10b   :  { %12 = sbr.rel (!%p10_p10) target bundleno = 4 (0x4), region = 104 }

</bundles_post_ra>
